<compile_context>
chip_gen: v7x
topology: tpu7x:2x2x1
jax: 0.10.0
libtpu: 0.0.40
codegen_flags: <defaults>
</compile_context>

<pallas_src>
import functools

import jax
import jax.numpy as jnp
from jax import lax
from jax.experimental import pallas as pl
from jax.experimental.pallas import tpu as pltpu


def _round_up(x, m):
    return ((x + m - 1) // m) * m


def _vmem_capacity_bytes():
    try:
        return int(pltpu.get_tpu_info().vmem_capacity_bytes)
    except Exception:
        return 64 << 20                      # conservative fallback (v7x per-core VMEM)


def _bf16_compute_ok():
    """bf16 VPU/EUP exists on v6e / v7x; v5e and older must compute elementwise in f32."""
    try:
        kind = jax.devices()[0].device_kind.lower()
    except Exception:
        return False
    return any(tag in kind for tag in ('v6', 'v7', '7x'))


def _att_block_kernel(x_ref, wf_ref, bf_ref, clip_ref, natt_ref, cla_ref, *,
                      activation, block_b, co_tile, bf16_elementwise):
    """One (batch-block, out-channel-tile) grid step.

    x_ref   : (Bb, C_in, T)     compute dtype
    wf_ref  : (2*tco, C_in)     compute dtype  (rows [0:tco] = att, [tco:] = cla)
    bf_ref  : (2*tco, 1)        f32
    clip_ref: (1, 1, Bb, tco)   f32
    natt_ref: (Bb, tco, T)      compute dtype
    cla_ref : (Bb, tco, T)      compute dtype
    """
    w = wf_ref[...]
    bias = bf_ref[...]

    def body(i, carry):
        xb = x_ref[i]                                                   # (C_in, T)
        # Fused att+cla 1x1 conv: one MXU matmul per batch element, f32 accumulation.
        y = jnp.dot(w, xb, preferred_element_type=jnp.float32) + bias   # (2*tco, T)
        if bf16_elementwise:
            y = y.astype(jnp.bfloat16)        # bf16 VPU/EUP path (v6e / v7x only)

        att = jnp.tanh(y[:co_tile, :])
        cla = y[co_tile:, :]
        if activation == 'sigmoid':
            cla = jax.nn.sigmoid(cla)

        # tanh bounds att to [-1, 1] -> exp(att) in [0.37, 2.72]; no max-subtraction needed.
        e = jnp.exp(att)
        denom = jnp.sum(e.astype(jnp.float32), axis=-1, keepdims=True)  # f32 denom
        inv = pl.reciprocal(denom, approx=True)                         # EUP vrcp
        norm_att = e * inv.astype(e.dtype)

        natt_ref[i] = norm_att.astype(natt_ref.dtype)
        cla_ref[i] = cla.astype(cla_ref.dtype)

        # Pooled clip output: f32 accumulation over time.
        pooled = jnp.sum(norm_att.astype(jnp.float32) * cla.astype(jnp.float32),
                         axis=-1)                                        # (tco,)
        clip_ref[0, 0, pl.ds(i, 1), :] = pooled[None, :].astype(clip_ref.dtype)
        return carry

    # fori_loop (not a static Python for): bounds each iteration's live ranges so the big
    # intermediates of all Bb batch elements are never live simultaneously.
    lax.fori_loop(0, block_b, body, 0, unroll=True)


def _choose_out_channel_tile(c_out, align):
    """Returns (c_out_tiled, tco, n_co) with c_out_tiled = n_co * tco >= c_out."""
    if c_out <= 256:
        return c_out, c_out, 1               # single full-extent tile; exact output, no pad
    c_out_p = _round_up(c_out, align)
    tco = align
    for cand in range(2 * align, 257, align):  # largest aligned divisor of c_out_p <= 256
        if c_out_p % cand == 0:
            tco = cand
    return c_out_p, tco, c_out_p // tco


def _choose_batch_block(b, per_batch_bytes, budget_bytes, max_bb):
    """Largest divisor of B (<= max_bb) whose double-buffered blocks fit the budget."""
    best = 1
    for d in range(1, max(1, min(b, max_bb)) + 1):
        if b % d == 0 and d * per_batch_bytes <= budget_bytes:
            best = d
    return best


def att_block_v2(x, w_att, b_att, w_cla, b_cla, *, activation='linear'):
    """AttBlockV2 forward.

    x: (B, C_in, T); w_*: (C_out, C_in) (Conv1d k=1); b_*: (C_out,).
    Returns (clip (B, C_out) f32, norm_att (B, C_out, T), cla (B, C_out, T)).
    norm_att / cla keep x.dtype (pass bf16 x/weights for the bandwidth-optimal path).
    """
    assert activation in ('linear', 'sigmoid')
    B, C_in, T = x.shape
    C_out = w_att.shape[0]
    cdtype = x.dtype
    isz = jnp.dtype(cdtype).itemsize
    is_bf16 = jnp.dtype(cdtype) == jnp.dtype(jnp.bfloat16)

    # ---- tiling decisions ---------------------------------------------------
    align = 16 if is_bf16 else 8
    C_out_t, tco, n_co = _choose_out_channel_tile(C_out, align)

    capacity = _vmem_capacity_bytes()
    budget = capacity - (8 << 20)                              # headroom for compiler scratch
    fixed = 2 * (2 * tco * C_in * isz + 2 * tco * 4)           # weights + bias (dbl-buffered)
    per_b = 2 * (C_in * T * isz + 2 * tco * T * isz + tco * 4)  # x + 2 outputs + clip, dbl-buf
    max_bb = 8
    if n_co == 1 and B >= 2:
        max_bb = min(max_bb, B // 2)    # keep >= 2 steps on a parallel axis (v7x: 2 TCs)
    Bb = _choose_batch_block(B, per_b, max(budget - fixed - (4 << 20), per_b), max_bb)
    n_b = B // Bb
    # TODO(synk): if a single batch element's blocks (C_in*T + 2*tco*T) approach the VMEM
    # budget (very long T), add a T grid axis with a two-pass softmax instead of shrinking
    # tiles further.

    # ---- parameter prep: fuse att+cla weights per output-channel tile -------
    def pad_rows(a, rows):
        return a if a.shape[0] == rows else jnp.pad(
            a, ((0, rows - a.shape[0]),) + ((0, 0),) * (a.ndim - 1))

    wa = pad_rows(w_att.astype(cdtype), C_out_t).reshape(n_co, tco, C_in)
    wc = pad_rows(w_cla.astype(cdtype), C_out_t).reshape(n_co, tco, C_in)
    w_f = jnp.concatenate([wa, wc], axis=1).reshape(2 * C_out_t, C_in)

    ba = pad_rows(b_att.reshape(C_out, 1).astype(jnp.float32), C_out_t)
    bc = pad_rows(b_cla.reshape(C_out, 1).astype(jnp.float32), C_out_t)
    b_f = jnp.concatenate([ba.reshape(n_co, tco, 1),
                           bc.reshape(n_co, tco, 1)], axis=1).reshape(2 * C_out_t, 1)

    used = 2 * (Bb * C_in * T * isz + 2 * tco * C_in * isz + 2 * tco * 4
                + 2 * Bb * tco * T * isz + Bb * tco * 4)
    vmem_limit = int(max(min(used + (8 << 20), capacity - (8 << 20)), 32 << 20))

    bf16_elem = is_bf16 and _bf16_compute_ok()

    kernel = functools.partial(
        _att_block_kernel, activation=activation, block_b=Bb, co_tile=tco,
        bf16_elementwise=bf16_elem)

    clip4, norm_att, cla = pl.pallas_call(
        kernel,
        out_shape=(
            jax.ShapeDtypeStruct((n_b, n_co, Bb, tco), jnp.float32),
            jax.ShapeDtypeStruct((B, C_out, T), cdtype),   # exact extents: no post-kernel
            jax.ShapeDtypeStruct((B, C_out, T), cdtype),   # slice copies of the big outputs
        ),
        grid_spec=pltpu.PrefetchScalarGridSpec(
            num_scalar_prefetch=0,
            grid=(n_b, n_co),                 # co is the fast axis: x block stays resident
            in_specs=[
                pl.BlockSpec((Bb, C_in, T), lambda b, co: (b, 0, 0)),
                pl.BlockSpec((2 * tco, C_in), lambda b, co: (co, 0)),
                pl.BlockSpec((2 * tco, 1), lambda b, co: (co, 0)),
            ],
            out_specs=[
                pl.BlockSpec((1, 1, Bb, tco), lambda b, co: (b, co, 0, 0)),
                pl.BlockSpec((Bb, tco, T), lambda b, co: (b, co, 0)),
                pl.BlockSpec((Bb, tco, T), lambda b, co: (b, co, 0)),
            ],
        ),
        compiler_params=pltpu.CompilerParams(
            dimension_semantics=("parallel", "parallel"),
            vmem_limit_bytes=vmem_limit),
    )(x, w_f, b_f)

    clip = clip4.transpose(0, 2, 1, 3).reshape(B, n_co * tco)[:, :C_out]
    return clip, norm_att, cla


def _reference(x, w_att, b_att, w_cla, b_cla, activation='linear'):
    x = x.astype(jnp.float32)
    wa = w_att.astype(jnp.float32)
    wc = w_cla.astype(jnp.float32)
    att = jnp.einsum('oc,bct->bot', wa, x) + b_att.astype(jnp.float32)[None, :, None]
    norm_att = jax.nn.softmax(jnp.tanh(att), axis=-1)
    cla = jnp.einsum('oc,bct->bot', wc, x) + b_cla.astype(jnp.float32)[None, :, None]
    if activation == 'sigmoid':
        cla = jax.nn.sigmoid(cla)
    pooled = jnp.sum(norm_att * cla, axis=2)
    return pooled, norm_att, cla


def _check(name, got, want, atol, rtol):
    g = got.astype(jnp.float32)
    w = want.astype(jnp.float32)
    ok = bool(jnp.allclose(g, w, atol=atol, rtol=rtol))
    assert ok, f"{name} mismatch: max abs err = {float(jnp.max(jnp.abs(g - w)))}"


if __name__ == "__main__":
    key = jax.random.PRNGKey(0)

    # --- small shapes implied by the module (primary check) -----------------
    B, in_features, out_features, T = 2, 32, 4, 8
    kx, kwa, kba, kwc, kbc = jax.random.split(key, 5)
    bound = 1.0 / jnp.sqrt(in_features)
    x = jax.random.normal(kx, (B, in_features, T), dtype=jnp.float32)
    w_att = jax.random.uniform(kwa, (out_features, in_features), minval=-bound, maxval=bound)
    b_att = jax.random.uniform(kba, (out_features,), minval=-bound, maxval=bound)
    w_cla = jax.random.uniform(kwc, (out_features, in_features), minval=-bound, maxval=bound)
    b_cla = jax.random.uniform(kbc, (out_features,), minval=-bound, maxval=bound)

    for act in ('linear', 'sigmoid'):
        out = att_block_v2(x, w_att, b_att, w_cla, b_cla, activation=act)
        jax.block_until_ready(out)
        ref = _reference(x, w_att, b_att, w_cla, b_cla, act)
        for n, g, r in zip(('clip', 'norm_att', 'cla'), out, ref):
            _check(f"f32/{act}/{n}", g, r, 2e-3, 2e-3)

    # --- bf16 fast path (bandwidth-bound production dtype) ------------------
    xb16 = x.astype(jnp.bfloat16)
    wab16 = w_att.astype(jnp.bfloat16)
    wcb16 = w_cla.astype(jnp.bfloat16)
    out = att_block_v2(xb16, wab16, b_att, wcb16, b_cla, activation='linear')
    jax.block_until_ready(out)
    ref = _reference(xb16, wab16, b_att, wcb16, b_cla, 'linear')
    for n, g, r in zip(('clip', 'norm_att', 'cla'), out, ref):
        _check(f"bf16/linear/{n}", g, r, 5e-2, 5e-2)

    # --- larger shape exercising batch blocks, C_out tiling, ragged T -------
    B2, C_in2, C_out2, T2 = 16, 64, 260, 140
    k1, k2, k3, k4, k5 = jax.random.split(jax.random.PRNGKey(1), 5)
    bound2 = 1.0 / jnp.sqrt(C_in2)
    x2 = jax.random.normal(k1, (B2, C_in2, T2), dtype=jnp.float32)
    wa2 = jax.random.uniform(k2, (C_out2, C_in2), minval=-bound2, maxval=bound2)
    ba2 = jax.random.uniform(k3, (C_out2,), minval=-bound2, maxval=bound2)
    wc2 = jax.random.uniform(k4, (C_out2, C_in2), minval=-bound2, maxval=bound2)
    bc2 = jax.random.uniform(k5, (C_out2,), minval=-bound2, maxval=bound2)
    out2 = att_block_v2(x2, wa2, ba2, wc2, bc2, activation='sigmoid')
    jax.block_until_ready(out2)
    ref2 = _reference(x2, wa2, ba2, wc2, bc2, 'sigmoid')
    for n, g, r in zip(('clip', 'norm_att', 'cla'), out2, ref2):
        _check(f"tiled/sigmoid/{n}", g, r, 2e-3, 2e-3)

    print("KERNEL_OK")
</pallas_src>

<mosaic_0001>
module attributes {stable_mosaic.version = 11 : i64} {
  func.func @_att_block_kernel(%arg0: i32, %arg1: i32, %arg2: memref<1x32x8xf32, #tpu.memory_space<vmem>>, %arg3: memref<8x32xf32, #tpu.memory_space<vmem>>, %arg4: memref<8x1xf32, #tpu.memory_space<vmem>>, %arg5: memref<1x1x1x4xf32, #tpu.memory_space<vmem>>, %arg6: memref<1x4x8xf32, #tpu.memory_space<vmem>>, %arg7: memref<1x4x8xf32, #tpu.memory_space<vmem>>) attributes {dimension_semantics = [#tpu.dimension_semantics<parallel>, #tpu.dimension_semantics<parallel>], iteration_bounds = array<i64: 2, 1>, scalar_prefetch = 0 : i64, scratch_operands = 0 : i64, tpu.core_type = #tpu.core_type<tc>, window_params = [{transform_indices = @transform_0, window_bounds = array<i64: 1, 32, 8>}, {transform_indices = @transform_1, window_bounds = array<i64: 8, 32>}, {transform_indices = @transform_2, window_bounds = array<i64: 8, 1>}, {transform_indices = @transform_3, window_bounds = array<i64: 1, 1, 1, 4>}, {transform_indices = @transform_4, window_bounds = array<i64: 1, 4, 8>}, {transform_indices = @transform_5, window_bounds = array<i64: 1, 4, 8>}]} {
    %c0 = arith.constant 0 : index
    %c0_0 = arith.constant 0 : index
    %0 = vector.load %arg3[%c0, %c0_0] : memref<8x32xf32, #tpu.memory_space<vmem>>, vector<8x32xf32>
    %c0_1 = arith.constant 0 : index
    %c0_2 = arith.constant 0 : index
    %1 = vector.load %arg4[%c0_1, %c0_2] : memref<8x1xf32, #tpu.memory_space<vmem>>, vector<8x1xf32>
    %c0_i32 = arith.constant 0 : i32
    %2 = arith.index_cast %c0_i32 : i32 to index
    %c0_3 = arith.constant 0 : index
    %c0_4 = arith.constant 0 : index
    %3 = vector.load %arg2[%2, %c0_3, %c0_4] : memref<1x32x8xf32, #tpu.memory_space<vmem>>, vector<1x32x8xf32>
    %4 = vector.shape_cast %3 : vector<1x32x8xf32> to vector<32x8xf32>
    %cst = arith.constant dense<0.000000e+00> : vector<8x8xf32>
    %5 = tpu.matmul %0, %4, %cst {dimension_numbers = #tpu.dot_dimension_numbers<[1], [0], [0], [1], [0, 0, 1, 1], [], []>} : vector<8x32xf32>, vector<32x8xf32>, vector<8x8xf32> -> vector<8x8xf32>
    %6 = vector.broadcast %1 : vector<8x1xf32> to vector<8x8xf32>
    %7 = arith.addf %5, %6 : vector<8x8xf32>
    %8 = vector.extract_strided_slice %7 {offsets = [0, 0], sizes = [4, 8], strides = [1, 1]} : vector<8x8xf32> to vector<4x8xf32>
    %9 = math.tanh %8 : vector<4x8xf32>
    %10 = vector.extract_strided_slice %7 {offsets = [4, 0], sizes = [4, 8], strides = [1, 1]} : vector<8x8xf32> to vector<4x8xf32>
    %11 = math.exp %9 : vector<4x8xf32>
    %cst_5 = arith.constant dense<0.000000e+00> : vector<4xf32>
    %12 = vector.multi_reduction <add>, %11, %cst_5 [1] : vector<4x8xf32> to vector<4xf32>
    %13 = vector.shape_cast %12 : vector<4xf32> to vector<4x1xf32>
    %14 = tpu.reciprocal %13 {approx = true} : vector<4x1xf32> -> vector<4x1xf32>
    %15 = vector.broadcast %14 : vector<4x1xf32> to vector<4x8xf32>
    %16 = arith.mulf %11, %15 : vector<4x8xf32>
    %17 = arith.index_cast %c0_i32 : i32 to index
    %c0_6 = arith.constant 0 : index
    %c0_7 = arith.constant 0 : index
    %18 = vector.load %arg6[%17, %c0_6, %c0_7] : memref<1x4x8xf32, #tpu.memory_space<vmem>>, vector<1x4x8xf32>
    %19 = vector.shape_cast %18 : vector<1x4x8xf32> to vector<4x8xf32>
    %20 = vector.shape_cast %16 : vector<4x8xf32> to vector<1x4x8xf32>
    tpu.vector_store %arg6[%17, %c0_6, %c0_7], %20 {strides = array<i32>} : memref<1x4x8xf32, #tpu.memory_space<vmem>>, vector<1x4x8xf32>,
    %21 = arith.index_cast %c0_i32 : i32 to index
    %c0_8 = arith.constant 0 : index
    %c0_9 = arith.constant 0 : index
    %22 = vector.load %arg7[%21, %c0_8, %c0_9] : memref<1x4x8xf32, #tpu.memory_space<vmem>>, vector<1x4x8xf32>
    %23 = vector.shape_cast %22 : vector<1x4x8xf32> to vector<4x8xf32>
    %24 = vector.shape_cast %10 : vector<4x8xf32> to vector<1x4x8xf32>
    tpu.vector_store %arg7[%21, %c0_8, %c0_9], %24 {strides = array<i32>} : memref<1x4x8xf32, #tpu.memory_space<vmem>>, vector<1x4x8xf32>,
    %25 = arith.mulf %16, %10 : vector<4x8xf32>
    %cst_10 = arith.constant dense<0.000000e+00> : vector<4xf32>
    %26 = vector.multi_reduction <add>, %25, %cst_10 [1] : vector<4x8xf32> to vector<4xf32>
    %27 = vector.shape_cast %26 : vector<4xf32> to vector<1x4xf32>
    %c0_11 = arith.constant 0 : index
    %c0_12 = arith.constant 0 : index
    %28 = arith.index_cast %c0_i32 : i32 to index
    %c0_13 = arith.constant 0 : index
    %29 = vector.load %arg5[%c0_11, %c0_12, %28, %c0_13] : memref<1x1x1x4xf32, #tpu.memory_space<vmem>>, vector<1x1x1x4xf32>
    %30 = vector.shape_cast %29 : vector<1x1x1x4xf32> to vector<1x4xf32>
    %31 = vector.shape_cast %27 : vector<1x4xf32> to vector<1x1x1x4xf32>
    tpu.vector_store %arg5[%c0_11, %c0_12, %28, %c0_13], %31 {strides = array<i32>} : memref<1x1x1x4xf32, #tpu.memory_space<vmem>>, vector<1x1x1x4xf32>,
    %c1_i32 = arith.constant 1 : i32
    return
  }
  func.func @transform_0(%arg0: i32, %arg1: i32) -> (i32, i32, i32) {
    %c0_i32 = arith.constant 0 : i32
    %c0_i32_0 = arith.constant 0 : i32
    %c0_i32_1 = arith.constant 0 : i32
    return %arg0, %c0_i32, %c0_i32_0 : i32, i32, i32
  }
  func.func @transform_1(%arg0: i32, %arg1: i32) -> (i32, i32) {
    %c0_i32 = arith.constant 0 : i32
    %c0_i32_0 = arith.constant 0 : i32
    return %arg1, %c0_i32 : i32, i32
  }
  func.func @transform_2(%arg0: i32, %arg1: i32) -> (i32, i32) {
    %c0_i32 = arith.constant 0 : i32
    %c0_i32_0 = arith.constant 0 : i32
    return %arg1, %c0_i32 : i32, i32
  }
  func.func @transform_3(%arg0: i32, %arg1: i32) -> (i32, i32, i32, i32) {
    %c0_i32 = arith.constant 0 : i32
    %c0_i32_0 = arith.constant 0 : i32
    %c0_i32_1 = arith.constant 0 : i32
    return %arg0, %arg1, %c0_i32, %c0_i32_0 : i32, i32, i32, i32
  }
  func.func @transform_4(%arg0: i32, %arg1: i32) -> (i32, i32, i32) {
    %c0_i32 = arith.constant 0 : i32
    %c0_i32_0 = arith.constant 0 : i32
    return %arg0, %arg1, %c0_i32 : i32, i32, i32
  }
  func.func @transform_5(%arg0: i32, %arg1: i32) -> (i32, i32, i32) {
    %c0_i32 = arith.constant 0 : i32
    %c0_i32_0 = arith.constant 0 : i32
    return %arg0, %arg1, %c0_i32 : i32, i32, i32
  }
}

</mosaic_0001>

<bundles_post_ra>
// kernel: tpu_custom_call.1
= control target key start
LH: loop header
LB: loop body
LE: loop exit
PB: predicated region body
PF: predicated region fallthrough
CT: control target
= control target key end

     0   :  { %11 = vsyncpa [#allocation3], 0  ;;  %s1101_s0 = inlined_call_operand.vmem [shape: f32[2,32,8], index: 0, kind: input, shape index: {}]   ;;  %s1102_s1 = inlined_call_operand.vmem [shape: f32[8,32], index: 1, kind: input, shape index: {}]   ;;  %s1103_s2 = inlined_call_operand.vmem [shape: f32[8,1], index: 2, kind: input, shape index: {}]   ;;  %s1104_s3 = inlined_call_operand.hbm [shape: f32[2,1,1,4], index: 3, kind: output, shape index: {0}]   ;;  %s1105_s4 = inlined_call_operand.hbm [shape: f32[2,4,8], index: 4, kind: output, shape index: {1}]   ;;  %s1106_s5 = inlined_call_operand.hbm [shape: f32[2,4,8], index: 5, kind: output, shape index: {2}]  }
   0x1   :  { %13 = vsyncpa [#allocation3 + $0x1], 0 }
   0x2   :  { %14 = vsyncpa [#allocation5], 0 }
   0x3   :  { %16 = vsyncpa [#allocation5 + $0x1], 0  ;;  %s910_s18 = smov 0   ;;  %s912_s19 = smov 0  }
   0x4   :  { %s914_s20 = smov 0   ;;  %s916_s21 = smov 0  }
   0x5   :  { %s918_s22 = smov 0   ;;  %s920_s23 = smov 0  }
   0x6 LB: > { %s615_s24 = sadd.s32 4294967295, %s871_s23   ;;  %s1107_s25 = sadd.s32 4294967294, %s871_s23   ;;  %s871_s23 = sphi %s920_s23, %s22_s23   ;;  %s867_s22 = sphi %s918_s22, %s1115_s22   ;;  %s863_s21 = sphi %s916_s21, %s1114_s21   ;;  %s859_s20 = sphi %s914_s20, %s1113_s20   ;;  %s855_s19 = sphi %s912_s19, %s1112_s19   ;;  %s851_s18 = sphi %s910_s18, %s1111_s18  }
   0x7   : > { %s34_s26 = sadd.s32 1, %s867_s22  ;;  %s121_s27 = sadd.s32 1, %s859_s20 }
   0x8   : > { %p36_p0 = scmp.ge.s32.totalorder %s34_s26, 2  ;;  %p131_p1 = scmp.ne.s32.totalorder %s859_s20, %s855_s19 }
   0x9   : > { %p132_p2 = scmp.eq.s32.totalorder %s615_s24, 1  ;;  %p137_p3 = scmp.ne.s32.totalorder %s855_s19, %s851_s18 }
   0xa   : > { %s1117_s26 = smov (%p36_p0, %s34_s26), 0  ;;  %p138_p5 = scmp.eq.s32.totalorder %s1107_s25, 1 }
   0xb   : > { %p952_p4 = por %p132_p2, %p131_p1  ;;  %s116_s29 = ssub.s32 %s867_s22, %s1117_s26 }
   0xc   : > { %p621_p6 = scmp.ge.s32.totalorder %s871_s23, 1  ;;  %p119_p7 = scmp.eq.s32.totalorder %s116_s29, 0 }
   0xd   : > { %p961_p8 = por %p138_p5, %p137_p3  ;;  %p234_p9 = scmp.lt.s32.totalorder %s871_s23, 3 }
   0xe   : > { %s967_s6 = scalar_select %p119_p7, %s859_s20, %s121_s27  }
   0xf   : > { %p235_p10 = pnand %p621_p6, %p234_p9 }
  0x10   : > { %p279_p11 = scmp.lt.s32.totalorder (!%p235_p10), %s863_s21, 1  ;;  %v873_v0 = vmov (!%p235_p10), 0.0|0.0   ;;  %vm874_vm0 = vmmov (!%p235_p10), 0   ;;  %v875_v1 = vmov (!%p235_p10), 0.0   ;;  %v293_v2 = vld [vmem:[%s1103_s2] sm:$0xff] (!%p235_p10)  ;;  %v876_v3 = vmov (!%p235_p10), 0  }
  0x11   : > { %238 = sbr.rel (%p235_p10) target bundleno = 593 (0x251), region = 32  ;;  %651 = vmatprep.subr.bf16.mxu0 (!%p235_p10), %v873_v0  ;;  %648 = vmatprep.mubr.msk.f32.mxu0 (!%p235_p10), %vm874_vm0, %v875_v1  ;;  %v292_v10 = vld [vmem:[%s1102_s1] sm:$0xff] (!%p235_p10)  ;;  %vm303_vm1 = vcmask (!%p235_p10), 261120   ;;  %s981_s16 = sand.u32 (!%p235_p10), 1, %s855_s19   ;;  %vm387_vm2 = vcmask (!%p235_p10), 64516   ;;  %vm380_vm3 = vcmask (!%p235_p10), 60416  }
  0x12   : > { %726 = vset.pattern.permute.xlu0 (!%p235_p10), %v876_v3  ;;  %s622_s17 = sshll.u32 (!%p235_p10), %s981_s16, 2  ;;  %s989_s7 = sand.u32 (!%p235_p10), 1, %s615_s24  }
  0x13   : > { %300 = vperm.xlu0 (!%p235_p10), %726, %v293_v2   ;;  %s984_s27 = scalar_lea.vmem (!%p235_p10), [#allocation6], %s622_s17  ;;  %s271_s29 = scalar_lea.vmem (!%p235_p10), [#allocation4], %s622_s17 }
  0x14   : > { %s630_s8 = sshll.u32 (!%p235_p10), %s863_s21, 6  ;;  %s444_s12 = sshll.u32 (!%p235_p10), %s271_s29, 4  ;;  %s445_s12 = int_to_ptr.vmem [resolvable:$true] %s444_s12 }
  0x15   : > { %s997_s11 = scalar_lea.hbm (!%p235_p10), %s1105_s4, %s630_s8  ;;  %s733_s14 = scalar_lea.vmem (!%p235_p10), %s445_s12, 64 }
  0x16   : > { %p734_p12 = scmp.ne.s32.totalorder (!%p235_p10), %s445_s12, %s733_s14  ;;  %s877_s15 = smov (!%p235_p10), [#allocation4]  }
  0x17   : > { %s737_s17 = sshll.u32 (!%p235_p10), %s877_s15, 4  ;;  %s738_s17 = int_to_ptr.vmem [resolvable:$false] %s737_s17 }
  0x18   : > { %s280_s9 = scalar_select %p279_p11, %s863_s21, 1 }
  0x19   : > { %p735_p13 = pnand %p734_p12, %p952_p4  ;;  %s739_s24 = scalar_lea.vmem %s738_s17, 128 }
  0x1a   : > { %s634_s10 = sshll.u32 %s280_s9, 5  ;;  %p740_p1 = scmp.lt.s32.totalorder %s445_s12, %s738_s17 }
  0x1b   : > { %s283_s13 = scalar_lea.vmem %s1101_s0, %s634_s10  ;;  %p736_p0 = pneg %p735_p13 }
  0x1c   : > { %v294_v4 = vld [vmem:[%s283_s13] sm:$0xff]  ;;  %v295_v5 = vld [vmem:[%s283_s13 + $0x8] sm:$0xff]  ;;  %v296_v6 = vld [vmem:[%s283_s13 + $0x10] sm:$0xff]  ;;  %p741_p2 = scmp.lt.s32.totalorder %s739_s24, %s733_s14 }
  0x1d   : > { %v652_v7 = vpack.c.bf16 %v295_v5, %v294_v4  ;;  %v297_v8 = vld [vmem:[%s283_s13 + $0x18] sm:$0xff]  ;;  %s411_s13 = scalar_lea.sflag [#allocation5], %s989_s7 }
  0x1e   : > { %v655_v9 = vpack.c.bf16 %v297_v8, %v296_v6  ;;  %p742_p3 = por %p741_p2, %p740_p1 }
  0x1f   : > { %653 = vmatpush3.bf16.msra.mxu0 %v652_v7 }
  0x20   : > { %654 = vmatprep.subr.bf16.mxu0 %v873_v0  ;;  %p743_p5 = pnand %p742_p3, %p736_p0 }
  0x23   : > { %656 = vmatpush3.bf16.msra.mxu0 %v655_v9 }
  0x26   : > { %649 = vmatmul.mubr.msk.f32.vlgmr.msra.gmra.mrb[0].mxu0 %vm303_vm1, %v292_v10 }
  0x92   : > { %v301_v11 = vpop.permute.xlu0 %300 }
  0xf9   : > { %v373_v12 = vpop.f32.mrb[0].mxu0 }
  0xfa   : > { %v374_v13 = vadd.f32 %v373_v12, %v301_v11  ;;  %v650_v14 = vpop.f32.mrb[1].mxu0 }
  0xfc   : > { %727 = vtanh.f32 %v374_v13  ;;  %388 = vst.msk [vmem:[%s984_s27 - $0x4] sm:$0xf0] %vm387_vm2, %v374_v13  ;;  %v390_v22 = vrot.slane %v374_v13, 4 }
 0x106   : > { %v728_v15 = vpop.eup %727 }
 0x107   : > { %v378_v16 = vmul.f32 1.442695, %v728_v15 }
 0x109   : > { %729 = vpow2.f32 %v378_v16 }
 0x113   : > { %v730_v17 = vpop.eup %729 }
 0x114   : > { %v381_v18 = vsel %vm380_vm3, %v730_v17, 0.0 }
 0x115   : > { %382 = vadd.xlane.f32.xlu0 %v381_v18 }
 0x1a2   : > { %v383_v19 = vpop.xlane.xlu0 %382 }
 0x1a3   : > { %731 = vrcp.f32 %v383_v19 }
 0x1ad   : > { %v732_v20 = vpop.eup %731 }
 0x1ae   : > { %v385_v21 = vmul.f32 %v732_v20, %v730_v17 }
 0x1b0   : > { %v392_v23 = vmul.f32 %v390_v22, %v385_v21  ;;  %386 = vst.msk [vmem:[%s271_s29] sm:$0xf] %vm380_vm3, %v385_v21 }
 0x1b2   : > { %v393_v24 = vsel %vm380_vm3, %v392_v23, 0.0 }
 0x1b3   : > { %394 = vadd.xlane.f32.xlu1 %v393_v24 }
 0x1b4   : > { %746 = shalt.err (!%p743_p5)
}
 0x1b5   : > { %s747_s29 = scalar_lea.hbm %s997_s11, 64  ;;  %s751_s15 = scalar_lea.hbm %s1105_s4, 128 }
 0x1b6   : > { %p748_p6 = scmp.ne.s32.totalorder %s997_s11, %s747_s29  ;;  %p752_p10 = scmp.lt.u32.totalorder %s997_s11, %s1105_s4 }
 0x1b7   : > { %p753_p11 = scmp.lt.u32.totalorder %s751_s15, %s747_s29  ;;  %p755_p13 = scmp.lt.u32.totalorder %s747_s29, %s997_s11 }
 0x1b8   : > { %p749_p7 = pnand %p748_p6, %p952_p4 }
 0x1b9   : > { %p754_p12 = por %p753_p11, %p752_p10 }
 0x1ba   : > { %p750_p9 = pneg %p749_p7 }
 0x1bb   : > { %p756_p0 = por %p755_p13, %p754_p12 }
 0x1bd   : > { %p757_p1 = pnand %p756_p0, %p750_p9 }
 0x1bf   : > { %760 = shalt.err (!%p757_p1)
}
 0x1c0   : > { %658 = dma.vmem_to_hbm [thread:$0]  (%p952_p4), %s445_s12, 64, %s997_s11, %s411_s13  }
 0x1c1   : > { %s1024_s25 = scalar_lea.hbm %s1106_s5, %s630_s8  ;;  %s458_s9 = sshll.u32 %s984_s27, 4  ;;  %s459_s9 = int_to_ptr.vmem [resolvable:$true] %s458_s9 }
 0x1c2   : > { %s761_s29 = scalar_lea.vmem %s459_s9, 64  ;;  %s878_s10 = smov [#allocation6]  }
 0x1c3   : > { %p762_p2 = scmp.ne.s32.totalorder %s459_s9, %s761_s29  ;;  %s765_s15 = sshll.u32 %s878_s10, 4  ;;  %s766_s15 = int_to_ptr.vmem [resolvable:$false] %s765_s15 }
 0x1c4   : > { %s767_s17 = scalar_lea.vmem %s766_s15, 128  ;;  %p768_p6 = scmp.lt.s32.totalorder %s459_s9, %s766_s15 }
 0x1c5   : > { %p763_p3 = pnand %p762_p2, %p952_p4  ;;  %p769_p7 = scmp.lt.s32.totalorder %s767_s17, %s761_s29 }
 0x1c7   : > { %p764_p5 = pneg %p763_p3  ;;  %p770_p9 = por %p769_p7, %p768_p6 }
 0x1c9   : > { %p771_p10 = pnand %p770_p9, %p764_p5 }
 0x1cb   : > { %774 = shalt.err (!%p771_p10)
}
 0x1cc   : > { %s775_s27 = scalar_lea.hbm %s1024_s25, 64  ;;  %s779_s12 = scalar_lea.hbm %s1106_s5, 128 }
 0x1cd   : > { %p776_p11 = scmp.ne.s32.totalorder %s1024_s25, %s775_s27  ;;  %p780_p0 = scmp.lt.u32.totalorder %s1024_s25, %s1106_s5 }
 0x1ce   : > { %p781_p1 = scmp.lt.u32.totalorder %s779_s12, %s775_s27  ;;  %p783_p3 = scmp.lt.u32.totalorder %s775_s27, %s1024_s25 }
 0x1cf   : > { %p777_p12 = pnand %p776_p11, %p952_p4 }
 0x1d0   : > { %p782_p2 = por %p781_p1, %p780_p0 }
 0x1d1   : > { %p778_p13 = pneg %p777_p12 }
 0x1d2   : > { %p784_p5 = por %p783_p3, %p782_p2 }
 0x1d4   : > { %p785_p6 = pnand %p784_p5, %p778_p13 }
 0x1d6   : > { %788 = shalt.err (!%p785_p6)
}
 0x1d7   : > { %659 = dma.vmem_to_hbm [thread:$0]  (%p952_p4), %s459_s9, 64, %s1024_s25, %s411_s13   ;;  %v397_v25 = vlaneseq  ;;  %vm404_vm4 = vcmask 24576  }
 0x1d8   : > { %s629_s29 = sshll.u32 %s863_s21, 4  ;;  %s264_s10 = scalar_lea.vmem [#allocation2], %s981_s16 }
 0x1d9   : > { %v398_v26 = vand.u32 127, %v397_v25  ;;  %v400_v27 = vshrl.u32 %v397_v25, 7  ;;  %s430_s15 = sshll.u32 %s264_s10, 4  ;;  %s1051_s7 = scalar_lea.hbm %s1104_s3, %s629_s29  ;;  %s1053_s15 = int_to_ptr.vmem [resolvable:$true] %s430_s15 }
 0x1da   : > { %s407_s13 = scalar_lea.sflag [#allocation3], %s981_s16  ;;  %s789_s25 = scalar_lea.vmem %s1053_s15, 16 }
 0x1db   : > { %v401_v28 = vsub.s32 %v398_v26, %v400_v27  ;;  %p790_p7 = scmp.ne.s32.totalorder %s1053_s15, %s789_s25  ;;  %s879_s21 = smov [#allocation2]  }
 0x1dc   : > { %s793_s9 = sshll.u32 %s879_s21, 4  ;;  %s794_s9 = int_to_ptr.vmem [resolvable:$false] %s793_s9 }
 0x1dd   : > { %p791_p9 = pnand %p790_p7, %p952_p4  ;;  %s795_s8 = scalar_lea.vmem %s794_s9, 32 }
 0x1de   : > { %p796_p11 = scmp.lt.s32.totalorder %s1053_s15, %s794_s9  ;;  %p797_p12 = scmp.lt.s32.totalorder %s795_s8, %s789_s25 }
 0x1df   : > { %p792_p10 = pneg %p791_p9 }
 0x1e0   : > { %p798_p13 = por %p797_p12, %p796_p11 }
 0x1e2   : > { %p799_p0 = pnand %p798_p13, %p792_p10 }
 0x240   : > { %v395_v29 = vpop.xlane.xlu1 %394 }
 0x241   : > { %v402_v30 = vrot.slane %v395_v29, %v401_v28 }
 0x243   : > { %405 = vst.msk [vmem:[%s264_s10] sm:$0x1] %vm404_vm4, %v402_v30 }
 0x244   : > { %802 = shalt.err (!%p799_p0)
}
 0x245   : > { %s803_s16 = scalar_lea.hbm %s1051_s7, 16  ;;  %s807_s14 = scalar_lea.hbm %s1104_s3, 32 }
 0x246   : > { %p804_p1 = scmp.ne.s32.totalorder %s1051_s7, %s803_s16  ;;  %p808_p5 = scmp.lt.u32.totalorder %s1051_s7, %s1104_s3 }
 0x247   : > { %p809_p6 = scmp.lt.u32.totalorder %s807_s14, %s803_s16  ;;  %p811_p9 = scmp.lt.u32.totalorder %s803_s16, %s1051_s7 }
 0x248   : > { %p805_p2 = pnand %p804_p1, %p952_p4 }
 0x249   : > { %p810_p7 = por %p809_p6, %p808_p5 }
 0x24a   : > { %p806_p3 = pneg %p805_p2 }
 0x24b   : > { %p812_p10 = por %p811_p9, %p810_p7 }
 0x24d   : > { %p813_p11 = pnand %p812_p10, %p806_p3 }
 0x24f   : > { %816 = shalt.err (!%p813_p11)
}
 0x250   : > { %657 = dma.vmem_to_hbm [thread:$0]  (%p952_p4), %s1053_s15, 16, %s1051_s7, %s407_s13  }
 0x251 PF: > { %p673_p12 = scmp.ge.s32.totalorder %s871_s23, 2  ;;  %s470_s10 = sand.u32 1, %s851_s18  }
 0x252   : > { %s471_s17 = scalar_lea.sflag [#allocation3], %s470_s10 }
 0x253   : > { %p664_p13 = pnand %p673_p12, %p961_p8 }
 0x255   : > { %842 = dma.done.wait (!%p664_p13), %s471_s17, 16  }
 0x256   : > { %844 = vsyncadd (!%p664_p13), %s471_s17, 4294967280  ;;  %s1110_s27 = sadd.s32 4294967294, %s871_s23  }
 0x257   : > { %s478_s25 = sand.u32 1, %s1110_s27  }
 0x258   : > { %s479_s21 = scalar_lea.sflag [#allocation5], %s478_s25 }
 0x259   : > { %846 = dma.done.wait (!%p664_p13), %s479_s21, 128  }
 0x25a   : > { %848 = vsyncadd (!%p664_p13), %s479_s21, 4294967168  ;;  %s22_s23 = sadd.s32 1, %s871_s23   ;;  %s1111_s18 = smov %s855_s19 }
 0x25b   : > { %p19_p4 = scmp.ge.s32.totalorder %s22_s23, 4   ;;  %s1112_s19 = smov %s859_s20 }
 0x25c   : > { %s1113_s20 = smov %s967_s6  ;;  %s1114_s21 = smov %s867_s22 }
 0x25d   : > { %s1115_s22 = smov %s1117_s26  ;;  %21 = sbr.rel (!%p19_p4) target bundleno = 6 (0x6), region = 105 }
 0x264   :  { %493 = vsyncpa [#allocation3], 1 }
 0x265   :  { %495 = vsyncpa [#allocation3 + $0x1], 1 }
 0x266   :  { %496 = vsyncpa [#allocation5], 1 }
 0x267   :  { %498 = vsyncpa [#allocation5 + $0x1], 1 }

</bundles_post_ra>
